<compile_context>
chip_gen: v5e
topology: v5e:2x2
jax: 0.10.0
libtpu: 0.0.40
codegen_flags: <defaults>
</compile_context>

<pallas_src>
import jax
import jax.numpy as jnp
from jax.experimental import pallas as pl
from jax.experimental.pallas import tpu as pltpu


def attention_kernel(x_ref, w_ref, len_ref, rep_ref, att_ref):
    x = x_ref[...]            # (bB, T, H) f32
    w = w_ref[...]            # (1, H)     f32
    lens = len_ref[...]       # (bB, 1)    i32

    bB, T, H = x.shape

    # scores = bmm(inputs, w^T).squeeze() -> (bB, T); relu.
    s = jnp.sum(x * w.reshape(1, 1, H), axis=-1)
    s = jnp.maximum(s, 0.0)

    # Fused masked softmax: softmax followed by mask + renormalize equals
    # masking the exponentials and normalizing once (the first softmax
    # denominator cancels).  Max is taken over all T positions so the result
    # bit-matches the reference ordering of operations.
    m = jnp.max(s, axis=-1, keepdims=True)
    e = jnp.exp(s - m)
    pos = jax.lax.broadcasted_iota(jnp.int32, (bB, T), 1)
    e = jnp.where(pos < lens, e, 0.0)
    # approx=False keeps the result within tight tolerance of the reference;
    # flip to approx=True (EUP slot, ~free) if ~1e-4 relative error is fine.
    att = e * pl.reciprocal(jnp.sum(e, axis=-1, keepdims=True), approx=False)

    att_ref[...] = att

    # representations = sum_t att[b,t] * x[b,t,h] -> batched contraction.
    rep3 = jnp.einsum('bqt,bth->bqh', att[:, None, :], x,
                      preferred_element_type=jnp.float32)
    rep_ref[...] = rep3[:, 0, :]


def attention_forward(inputs, lengths, att_weights, *, block_b=None):
    """inputs: (B, T, H) f32, lengths: (B,) int, att_weights: (1, H) f32."""
    B, T, H = inputs.shape
    lens2d = lengths.astype(jnp.int32).reshape(B, 1)

    # Batch tile size: the input block is double-buffered by the pipeline, so
    # target ~6 MiB per (bB, T, H) f32 block (-> ~12 MiB resident + small
    # att/rep tiles), which fits the default scoped VMEM on every generation.
    # Keep bB sublane aligned (multiple of 8) unless it covers the whole batch.
    if block_b is None:
        row_bytes = T * H * 4
        block_b = max(8, ((6 * 1024 * 1024) // max(row_bytes, 1)) // 8 * 8)
    block_b = min(block_b, B)

    grid = (pl.cdiv(B, block_b),)

    # NOTE: for production shapes with very small T, padding the attn output's
    # last dim to a multiple of 128 at the wrapper would make its stores
    # lane-dense; at these sizes the kernel is DMA-bound on `inputs` anyway.
    rep, att = pl.pallas_call(
        attention_kernel,
        out_shape=(
            jax.ShapeDtypeStruct((B, H), jnp.float32),
            jax.ShapeDtypeStruct((B, T), jnp.float32),
        ),
        grid=grid,
        in_specs=[
            pl.BlockSpec((block_b, T, H), lambda b: (b, 0, 0)),  # inputs
            pl.BlockSpec((1, H), lambda b: (0, 0)),              # att_weights
            pl.BlockSpec((block_b, 1), lambda b: (b, 0)),        # lengths
        ],
        out_specs=(
            pl.BlockSpec((block_b, H), lambda b: (b, 0)),        # repr
            pl.BlockSpec((block_b, T), lambda b: (b, 0)),        # attn
        ),
        compiler_params=pltpu.CompilerParams(
            dimension_semantics=("parallel",),
            vmem_limit_bytes=32 * 1024 * 1024,
        ),
    )(inputs, att_weights, lens2d)
    return rep, att


def reference_forward(inputs, lengths, att_weights):
    s = jnp.einsum('bth,h->bt', inputs, att_weights[0])
    s = jax.nn.relu(s)
    att = jax.nn.softmax(s, axis=-1)
    T = inputs.shape[1]
    mask = (jnp.arange(T)[None, :] < lengths[:, None]).astype(jnp.float32)
    masked = att * mask
    att = masked / jnp.sum(masked, axis=-1, keepdims=True)
    rep = jnp.sum(inputs * att[:, :, None], axis=1)
    return rep, att


if __name__ == "__main__":
    B, T, H = 16, 8, 32
    key = jax.random.PRNGKey(0)
    k_x, k_w = jax.random.split(key)

    inputs = jax.random.normal(k_x, (B, T, H), dtype=jnp.float32)
    # Mix of full-length and shorter sequences (all >= 1; length 0 divides by
    # zero in the reference too, so it is intentionally not special-cased).
    lengths = jnp.array([8, 5, 3, 8, 1, 7, 2, 6, 8, 4, 5, 3, 7, 8, 2, 6],
                        dtype=jnp.int32)

    # Parameter init mirroring torch: uniform(-stdv, stdv), stdv = 1/sqrt(H)
    stdv = 1.0 / (H ** 0.5)
    att_weights = jax.random.uniform(
        k_w, (1, H), dtype=jnp.float32, minval=-stdv, maxval=stdv)

    # block_b=8 so the small demo actually exercises a 2-step batch grid.
    rep, att = attention_forward(inputs, lengths, att_weights, block_b=8)
    jax.block_until_ready((rep, att))

    rep_ref, att_ref = reference_forward(inputs, lengths, att_weights)
    assert jnp.allclose(att, att_ref, atol=2e-5, rtol=2e-5)
    assert jnp.allclose(rep, rep_ref, atol=2e-5, rtol=2e-5)

    print("KERNEL_OK")
</pallas_src>

<mosaic_0001>
module attributes {stable_mosaic.version = 11 : i64} {
  func.func @attention_kernel(%arg0: i32, %arg1: memref<8x8x32xf32, #tpu.memory_space<vmem>>, %arg2: memref<1x32xf32, #tpu.memory_space<vmem>>, %arg3: memref<8x1xi32, #tpu.memory_space<vmem>>, %arg4: memref<8x32xf32, #tpu.memory_space<vmem>>, %arg5: memref<8x8xf32, #tpu.memory_space<vmem>>) attributes {dimension_semantics = [#tpu.dimension_semantics<parallel>], iteration_bounds = array<i64: 2>, scalar_prefetch = 0 : i64, scratch_operands = 0 : i64, tpu.core_type = #tpu.core_type<tc>, window_params = [{transform_indices = @transform_0, window_bounds = array<i64: 8, 8, 32>}, {pipeline_mode = #tpu.pipeline_mode<synchronous>, transform_indices = @transform_1, window_bounds = array<i64: 1, 32>}, {transform_indices = @transform_2, window_bounds = array<i64: 8, 1>}, {transform_indices = @transform_3, window_bounds = array<i64: 8, 32>}, {transform_indices = @transform_4, window_bounds = array<i64: 8, 8>}]} {
    %c0 = arith.constant 0 : index
    %c0_0 = arith.constant 0 : index
    %c0_1 = arith.constant 0 : index
    %0 = vector.load %arg1[%c0, %c0_0, %c0_1] : memref<8x8x32xf32, #tpu.memory_space<vmem>>, vector<8x8x32xf32>
    %c0_2 = arith.constant 0 : index
    %c0_3 = arith.constant 0 : index
    %1 = vector.load %arg2[%c0_2, %c0_3] : memref<1x32xf32, #tpu.memory_space<vmem>>, vector<1x32xf32>
    %c0_4 = arith.constant 0 : index
    %c0_5 = arith.constant 0 : index
    %2 = vector.load %arg3[%c0_4, %c0_5] : memref<8x1xi32, #tpu.memory_space<vmem>>, vector<8x1xi32>
    %3 = vector.shape_cast %1 : vector<1x32xf32> to vector<1x1x32xf32>
    %4 = vector.broadcast %3 : vector<1x1x32xf32> to vector<8x8x32xf32>
    %5 = arith.mulf %0, %4 : vector<8x8x32xf32>
    %cst = arith.constant dense<0.000000e+00> : vector<8x8xf32>
    %6 = vector.multi_reduction <add>, %5, %cst [2] : vector<8x8x32xf32> to vector<8x8xf32>
    %cst_6 = arith.constant 0.000000e+00 : f32
    %7 = vector.broadcast %cst_6 : f32 to vector<8x8xf32>
    %8 = arith.maximumf %6, %7 : vector<8x8xf32>
    %cst_7 = arith.constant dense<0xFF800000> : vector<8xf32>
    %9 = vector.multi_reduction <maximumf>, %8, %cst_7 [1] : vector<8x8xf32> to vector<8xf32>
    %10 = vector.shape_cast %9 : vector<8xf32> to vector<8x1xf32>
    %11 = vector.broadcast %10 : vector<8x1xf32> to vector<8x8xf32>
    %12 = arith.subf %8, %11 : vector<8x8xf32>
    %13 = math.exp %12 : vector<8x8xf32>
    %14 = tpu.iota {dimensions = array<i32: 1>} : vector<8x8xi32>
    %15 = vector.broadcast %2 : vector<8x1xi32> to vector<8x8xi32>
    %16 = arith.cmpi slt, %14, %15 : vector<8x8xi32>
    %cst_8 = arith.constant 0.000000e+00 : f32
    %17 = vector.broadcast %cst_8 : f32 to vector<8x8xf32>
    %18 = arith.select %16, %13, %17 : vector<8x8xi1>, vector<8x8xf32>
    %cst_9 = arith.constant dense<0.000000e+00> : vector<8xf32>
    %19 = vector.multi_reduction <add>, %18, %cst_9 [1] : vector<8x8xf32> to vector<8xf32>
    %20 = vector.shape_cast %19 : vector<8xf32> to vector<8x1xf32>
    %21 = tpu.reciprocal %20 : vector<8x1xf32> -> vector<8x1xf32>
    %22 = vector.broadcast %21 : vector<8x1xf32> to vector<8x8xf32>
    %23 = arith.mulf %18, %22 : vector<8x8xf32>
    %c0_10 = arith.constant 0 : index
    %c0_11 = arith.constant 0 : index
    %24 = vector.load %arg5[%c0_10, %c0_11] : memref<8x8xf32, #tpu.memory_space<vmem>>, vector<8x8xf32>
    tpu.vector_store %arg5[%c0_10, %c0_11], %23 {strides = array<i32>} : memref<8x8xf32, #tpu.memory_space<vmem>>, vector<8x8xf32>,
    %25 = vector.shape_cast %23 : vector<8x8xf32> to vector<8x1x8xf32>
    "tpu.trace_start"() <{level = 10 : i32, message = "bqt,bth->bqh"}> : () -> ()
    %cst_12 = arith.constant dense<0.000000e+00> : vector<8x1x32xf32>
    %26 = tpu.matmul %25, %0, %cst_12 {dimension_numbers = #tpu.dot_dimension_numbers<[2], [1], [1], [2], [0, 0, 0, 1, 1, 2], [0], [0]>} : vector<8x1x8xf32>, vector<8x8x32xf32>, vector<8x1x32xf32> -> vector<8x1x32xf32>
    "tpu.trace_stop"() : () -> ()
    %27 = vector.shape_cast %26 : vector<8x1x32xf32> to vector<8x32xf32>
    %c0_13 = arith.constant 0 : index
    %c0_14 = arith.constant 0 : index
    %28 = vector.load %arg4[%c0_13, %c0_14] : memref<8x32xf32, #tpu.memory_space<vmem>>, vector<8x32xf32>
    tpu.vector_store %arg4[%c0_13, %c0_14], %27 {strides = array<i32>} : memref<8x32xf32, #tpu.memory_space<vmem>>, vector<8x32xf32>,
    return
  }
  func.func @transform_0(%arg0: i32) -> (i32, i32, i32) {
    %c0_i32 = arith.constant 0 : i32
    %c0_i32_0 = arith.constant 0 : i32
    %c0_i32_1 = arith.constant 0 : i32
    return %arg0, %c0_i32, %c0_i32_0 : i32, i32, i32
  }
  func.func @transform_1(%arg0: i32) -> (i32, i32) {
    %c0_i32 = arith.constant 0 : i32
    %c0_i32_0 = arith.constant 0 : i32
    %c0_i32_1 = arith.constant 0 : i32
    return %c0_i32, %c0_i32_0 : i32, i32
  }
  func.func @transform_2(%arg0: i32) -> (i32, i32) {
    %c0_i32 = arith.constant 0 : i32
    %c0_i32_0 = arith.constant 0 : i32
    return %arg0, %c0_i32 : i32, i32
  }
  func.func @transform_3(%arg0: i32) -> (i32, i32) {
    %c0_i32 = arith.constant 0 : i32
    %c0_i32_0 = arith.constant 0 : i32
    return %arg0, %c0_i32 : i32, i32
  }
  func.func @transform_4(%arg0: i32) -> (i32, i32) {
    %c0_i32 = arith.constant 0 : i32
    %c0_i32_0 = arith.constant 0 : i32
    return %arg0, %c0_i32 : i32, i32
  }
}

</mosaic_0001>

<bundles_post_ra>
// kernel: tpu_custom_call.1
= control target key start
LH: loop header
LB: loop body
LE: loop exit
PB: predicated region body
PF: predicated region fallthrough
CT: control target
= control target key end

     0   :  { %10 = vsyncpa [#allocation3], 0  ;;  %s1218_s0 = inlined_call_operand.hbm [shape: f32[16,8,32], index: 0, kind: input, shape index: {}]   ;;  %s1219_s1 = inlined_call_operand.vmem [shape: f32[1,32], index: 1, kind: input, shape index: {}]   ;;  %s1220_s2 = inlined_call_operand.vmem [shape: s32[16,1], index: 2, kind: input, shape index: {}]   ;;  %s1221_s3 = inlined_call_operand.hbm [shape: f32[16,32], index: 3, kind: output, shape index: {0}]   ;;  %s1222_s4 = inlined_call_operand.vmem [shape: f32[16,8], index: 4, kind: output, shape index: {1}]  }
   0x1   :  { %12 = vsyncpa [#allocation3 + $0x1], 0 }
   0x2   :  { %13 = vsyncpa [#allocation4], 0 }
   0x3   :  { %15 = vsyncpa [#allocation4 + $0x1], 0  ;;  %s1009_s15 = smov 0   ;;  %s1011_s16 = smov 0  }
   0x4   :  { %s1013_s17 = smov 0   ;;  %s1015_s18 = smov 0  }
   0x5 LB: > { %s1030_s19 = sadd.s32 4294967295, %s979_s18   ;;  %s788_s20 = sadd.s32 4294967294, %s979_s18   ;;  %s979_s18 = sphi %s1015_s18, %s1232_s18   ;;  %s975_s17 = sphi %s1013_s17, %s1231_s17   ;;  %s971_s16 = sphi %s1011_s16, %s1230_s16   ;;  %s967_s15 = sphi %s1009_s15, %s1229_s15  }
   0x6   : > { %s1034_s21 = sadd.s32 1, %s979_s18   ;;  %s28_s22 = sadd.s32 1, %s975_s17 }
   0x7   : > { %s25_s23 = ssub.s32 %s979_s18, %s1034_s21  ;;  %p35_p0 = scmp.ne.s32.totalorder %s975_s17, %s971_s16 }
   0x8   : > { %p26_p1 = scmp.eq.s32.totalorder %s25_s23, 0  ;;  %p36_p2 = scmp.eq.s32.totalorder %s979_s18, 0 }
   0x9   : > { %p41_p3 = scmp.ne.s32.totalorder %s971_s16, %s967_s15  ;;  %p42_p4 = scmp.eq.s32.totalorder %s1030_s19, 0 }
   0xa   : > { %s1046_s24 = scalar_select %p26_p1, %s975_s17, %s28_s22  }
   0xb   : > { %p1048_p5 = por %p36_p2, %p35_p0  ;;  %p1052_p6 = por %p42_p4, %p41_p3 }
   0xc   : > { %p112_p7 = scmp.eq.s32.totalorder %s1030_s19, 1  ;;  %p118_p8 = scmp.eq.s32.totalorder %s788_s20, 1 }
   0xd   : > { %p824_p10 = scmp.lt.s32.totalorder %s979_s18, 2  ;;  %s167_s29 = sand.u32 1, %s975_s17  }
   0xe   : > { %p1059_p11 = por %p112_p7, %p35_p0  ;;  %p1063_p12 = por %p118_p8, %p41_p3 }
   0xf   : > { %s811_s30 = sshll.u32 %s979_s18, 6  ;;  %s791_s5 = sshll.u32 %s167_s29, 6 }
  0x10   : > { %s176_s8 = scalar_lea.hbm %s1218_s0, %s811_s30  ;;  %s171_s10 = scalar_lea.vmem [#allocation2], %s791_s5 }
  0x11   : > { %s177_s9 = sshll.u32 %s176_s8, 4  ;;  %s179_s11 = sshll.u32 %s171_s10, 4  ;;  %s178_s9 = int_to_ptr.hbm [resolvable:$true] %s177_s9  ;;  %s180_s11 = int_to_ptr.vmem [resolvable:$true] %s179_s11 }
  0x12   : > { %p1074_p13 = pnand %p824_p10, %p1048_p5  ;;  %p794_p0 = scmp.ge.s32.totalorder %s979_s18, 1 }
  0x13   : > { %p194_p1 = scmp.lt.s32.totalorder %s979_s18, 3  ;;  %s168_s13 = scalar_lea.sflag [#allocation3], %s167_s29 }
  0x14   : > { %s883_s14 = sshra.s32 %s178_s9, 4  ;;  %p887_p3 = pneg %p1074_p13  ;;  %s884_s14 = int_to_ptr.hbm [resolvable:$true] %s883_s14 }
  0x15   : > { %s885_s20 = scalar_lea.hbm %s884_s14, 64  ;;  %s890_s25 = scalar_lea.hbm %s1218_s0, 128 }
  0x16   : > { %p886_p2 = scmp.ne.s32.totalorder %s884_s14, %s885_s20  ;;  %p891_p5 = scmp.lt.s32.totalorder %s884_s14, %s1218_s0 }
  0x17   : > { %p892_p8 = scmp.lt.s32.totalorder %s890_s25, %s885_s20 }
  0x18   : > { %p888_p4 = pnand %p887_p3, %p886_p2 }
  0x19   : > { %p893_p10 = por %p892_p8, %p891_p5 }
  0x1a   : > { %p889_p7 = pneg %p888_p4 }
  0x1c   : > { %p894_p9 = pnand %p893_p10, %p889_p7 }
  0x1e   : > { %897 = shalt.err (!%p894_p9)
}
  0x1f   : > { %s981_s29 = smov 128   ;;  %s982_s6 = smov 8  }
  0x20   : > { %819 = dma.hbm_to_vmem [thread:$0]  (!%p1074_p13), %s178_s9, 1024, %s180_s11, %s168_s13, %s981_s29, %s981_s29, %s982_s6  }
  0x21   : > { %p195_p2 = pnand %p794_p0, %p194_p1 }
  0x22   : > { %s1095_s7 = sand.u32 (!%p195_p2), 1, %s971_s16  }
  0x23   : > { %198 = sbr.rel (%p195_p2) target bundleno = 736 (0x2e0), region = 32  ;;  %s795_s8 = sshll.u32 (!%p195_p2), %s1095_s7, 6 }
  0x24   : > { %s201_s10 = scalar_lea.sflag (!%p195_p2), [#allocation3], %s1095_s7  ;;  %s204_s14 = scalar_lea.vmem (!%p195_p2), [#allocation2], %s795_s8 }
  0x28   : > { %958 = dma.done.wait (%p1052_p6), %s201_s10, 1024  }
  0x29   : > { %960 = vsyncadd (%p1052_p6), %s201_s10, 4294966272  ;;  %v247_v0 = vld [vmem:[%s204_s14] sm:$0xff]  ;;  %vm268_vm0 = vcmask 261120   ;;  %v249_v2 = vld [vmem:[%s204_s14 + $0x10] sm:$0xff]  ;;  %v309_v28 = vlaneseq  ;;  %vm319_vm1 = vcmask 1041409   ;;  %vm321_vm2 = vcmask 1042434  }
  0x2a   : > { %v864_v1 = vld [vmem:[%s1219_s1] ss:$0 sm:$0xff]  ;;  %v248_v4 = vld [vmem:[%s204_s14 + $0x8] sm:$0xff]  ;;  %476 = vmatpush.msra.mxu0 %v247_v0  ;;  %v250_v8 = vld [vmem:[%s204_s14 + $0x18] sm:$0xff]  ;;  %520 = vmatpush.msra.mxu2 %v249_v2  ;;  %vm323_vm3 = vcmask 1043459   ;;  %vm325_vm4 = vcmask 1044484  }
  0x2b   : > { %v251_v3 = vld [vmem:[%s204_s14 + $0x20] sm:$0xff]  ;;  %v260_v5 = vmul.f32 %v864_v1, %v247_v0  ;;  %v262_v6 = vmul.f32 %v864_v1, %v249_v2  ;;  %498 = vmatpush.msra.mxu1 %v248_v4  ;;  %v253_v9 = vld [vmem:[%s204_s14 + $0x30] sm:$0xff]  ;;  %v254_v10 = vld [vmem:[%s204_s14 + $0x38] sm:$0xff]  ;;  %542 = vmatpush.msra.mxu3 %v250_v8  ;;  %v261_v15 = vmul.f32 %v864_v1, %v248_v4  ;;  %v1114_v29 = vand.u32 127, %v309_v28  ;;  %p239_p6 = scmp.lt.s32.totalorder %s1030_s19, 1  ;;  %s796_s5 = sshll.u32 %s1095_s7, 3 }
  0x2c   : > { %v264_v7 = vmul.f32 %v864_v1, %v251_v3  ;;  %v252_v14 = vld [vmem:[%s204_s14 + $0x28] sm:$0xff]  ;;  %608 = vmatpush.msrb.mxu2 %v253_v9  ;;  %v263_v16 = vmul.f32 %v864_v1, %v250_v8  ;;  %564 = vmatpush.msrb.mxu0 %v251_v3  ;;  %v266_v21 = vmul.f32 %v864_v1, %v253_v9  ;;  %vm327_vm5 = vcmask 1045509   ;;  %s808_s29 = sshll.u32 %s1030_s19, 3  ;;  %s231_s14 = scalar_lea.vmem [#allocation5], %s796_s5 }
  0x2d   : > { %v269_v11 = vsel %vm268_vm0, %v260_v5, 0.0  ;;  %v275_v12 = vsel %vm268_vm0, %v262_v6, 0.0  ;;  %630 = vmatpush.msrb.mxu3 %v254_v10  ;;  %v265_v17 = vmul.f32 %v864_v1, %v252_v14  ;;  %586 = vmatpush.msrb.mxu1 %v252_v14  ;;  %v272_v18 = vsel %vm268_vm0, %v261_v15, 0.0  ;;  %s1137_s26 = scalar_select %p239_p6, %s1030_s19, 1 }
  0x2e   : > { %v281_v13 = vsel %vm268_vm0, %v264_v7, 0.0  ;;  %270 = vadd.xlane.f32.xlu0 %v269_v11  ;;  %276 = vadd.xlane.f32.xlu1 %v275_v12  ;;  %v278_v19 = vsel %vm268_vm0, %v263_v16, 0.0  ;;  %v267_v22 = vmul.f32 %v864_v1, %v254_v10  ;;  %v287_v23 = vsel %vm268_vm0, %v266_v21, 0.0  ;;  %s674_s10 = scalar_lea.hbm %s1221_s3, %s808_s29  ;;  %s676_s9 = sshll.u32 %s231_s14, 4  ;;  %s677_s9 = int_to_ptr.vmem [resolvable:$true] %s676_s9 }
  0x2f   : > { %282 = vadd.xlane.f32.xlu2 %v281_v13  ;;  %v284_v20 = vsel %vm268_vm0, %v265_v17, 0.0  ;;  %vm329_vm6 = vcmask 1046534   ;;  %vm331_vm7 = vcmask 1047559   ;;  %vm334_vm8 = vcmask 64512   ;;  %s797_s12 = sshll.u32 %s1137_s26, 3  ;;  %s678_s11 = sshll.u32 %s674_s10, 4  ;;  %s679_s11 = int_to_ptr.hbm [resolvable:$true] %s678_s11 }
  0x30   : > { %v290_v24 = vsel %vm268_vm0, %v267_v22, 0.0  ;;  %v983_v59 = vmov 0   ;;  %s242_s22 = scalar_lea.vmem %s1220_s2, %s797_s12  ;;  %s246_s30 = scalar_lea.vmem %s1222_s4, %s797_s12 }
  0x31   : > { %863 = vset.pattern.permute.xlu2 %v983_v59  ;;  %862 = vset.pattern.permute.xlu1 %v983_v59  ;;  %s660_s19 = scalar_lea.sflag [#allocation4], %s1095_s7  ;;  %s927_s26 = sshra.s32 %s679_s11, 4  ;;  %s928_s26 = int_to_ptr.hbm [resolvable:$true] %s927_s26 }
  0x32   : > { %861 = vset.pattern.permute.xlu0 %v983_v59  ;;  %s929_s12 = scalar_lea.hbm %s928_s26, 8  ;;  %p934_p1 = scmp.lt.s32.totalorder %s928_s26, %s1221_s3 }
  0x33   : > { %p930_p9 = scmp.ne.s32.totalorder %s928_s26, %s929_s12 }
  0x35   : > { %p931_p13 = pnand %p930_p9, %p1059_p11 }
  0x36   : > { %273 = vadd.xlane.f32.xlu0 %v272_v18  ;;  %279 = vadd.xlane.f32.xlu1 %v278_v19 }
  0x37   : > { %285 = vadd.xlane.f32.xlu2 %v284_v20  ;;  %p932_p0 = pneg %p931_p13 }
  0x3e   : > { %288 = vadd.xlane.f32.xlu0 %v287_v23  ;;  %291 = vadd.xlane.f32.xlu1 %v290_v24 }
  0xa1   : > { %v271_v25 = vpop.xlane.xlu0 %270  ;;  %v277_v26 = vpop.xlane.xlu1 %276 }
  0xa2   : > { %v283_v27 = vpop.xlane.xlu2 %282  ;;  %v293_v30 = vmax.f32 %v271_v25, 0.0  ;;  %v295_v31 = vmax.f32 %v277_v26, 0.0 }
  0xa3   : > { %v297_v38 = vmax.f32 %v283_v27, 0.0 }
  0xa4   : > { %v311_v37 = vperm.slane %v293_v30, %v1114_v29  ;;  %v313_v41 = vperm.slane %v295_v31, %v1114_v29 }
  0xa5   : > { %v315_v45 = vperm.slane %v297_v38, %v1114_v29 }
  0xa9   : > { %v274_v32 = vpop.xlane.xlu0 %273  ;;  %v280_v33 = vpop.xlane.xlu1 %279 }
  0xaa   : > { %v294_v34 = vmax.f32 %v274_v32, 0.0  ;;  %v296_v35 = vmax.f32 %v280_v33, 0.0  ;;  %v1116_v36 = vpop.xlane.xlu2 %285 }
  0xab   : > { %v298_v42 = vmax.f32 %v1116_v36, 0.0 }
  0xac   : > { %v312_v39 = vperm.slane %v294_v34, %v1114_v29  ;;  %v314_v40 = vperm.slane %v296_v35, %v1114_v29 }
  0xad   : > { %v316_v47 = vperm.slane %v298_v42, %v1114_v29 }
  0xae   : > { %v320_v43 = vsel %vm319_vm1, %v312_v39, %v311_v37 }
  0xaf   : > { %v322_v44 = vsel %vm321_vm2, %v313_v41, %v320_v43 }
  0xb0   : > { %v324_v46 = vsel %vm323_vm3, %v314_v40, %v322_v44 }
  0xb1   : > { %v289_v48 = vpop.xlane.xlu0 %288  ;;  %v292_v49 = vpop.xlane.xlu1 %291  ;;  %v326_v52 = vsel %vm325_vm4, %v315_v45, %v324_v46 }
  0xb2   : > { %v299_v50 = vmax.f32 %v289_v48, 0.0  ;;  %v300_v51 = vmax.f32 %v292_v49, 0.0  ;;  %v328_v55 = vsel %vm327_vm5, %v316_v47, %v326_v52 }
  0xb4   : > { %v317_v53 = vperm.slane %v299_v50, %v1114_v29  ;;  %v318_v54 = vperm.slane %v300_v51, %v1114_v29 }
  0xb6   : > { %v330_v56 = vsel %vm329_vm6, %v317_v53, %v328_v55 }
  0xb7   : > { %v332_v57 = vsel %vm331_vm7, %v318_v54, %v330_v56 }
  0xb8   : > { %v335_v58 = vsel %vm334_vm8, %v332_v57, -inf }
  0xb9   : > { %336 = vmax.xlane.f32.xlu2 %v335_v58 }
 0x12c   : > { %v337_v60 = vpop.xlane.xlu2 %336 }
 0x12d   : > { %v341_v61 = vperm.slane %v337_v60, 2  ;;  %v340_v62 = vperm.slane %v337_v60, 1  ;;  %v339_v63 = vperm.slane %v337_v60, 0  ;;  %v342_v3 = vperm.slane %v337_v60, 3 }
 0x12e   : > { %v343_v4 = vperm.slane %v337_v60, 4  ;;  %v346_v5 = vperm.slane %v337_v60, 7  ;;  %v344_v13 = vperm.slane %v337_v60, 5  ;;  %v345_v15 = vperm.slane %v337_v60, 6 }
 0x12f   : > { %v357_v0 = vsub.f32 %v295_v31, %v341_v61  ;;  %v356_v1 = vsub.f32 %v294_v34, %v340_v62  ;;  %v355_v2 = vsub.f32 %v293_v30, %v339_v63  ;;  %v358_v9 = vsub.f32 %v296_v35, %v342_v3  ;;  %v256_v30 = vld [vmem:[%s242_s22] sm:$0xff]  ;;  %s933_s22 = scalar_lea.hbm %s1221_s3, 16 }
 0x130   : > { %v359_v10 = vsub.f32 %v297_v38, %v343_v4  ;;  %v362_v11 = vsub.f32 %v300_v51, %v346_v5  ;;  %v360_v20 = vsub.f32 %v298_v42, %v344_v13  ;;  %v361_v21 = vsub.f32 %v299_v50, %v345_v15  ;;  %p935_p3 = scmp.lt.s32.totalorder %s933_s22, %s929_s12 }
 0x131   : > { %v367_v6 = vmul.f32 1.442695, %v357_v0  ;;  %v365_v7 = vmul.f32 1.442695, %v356_v1  ;;  %v363_v8 = vmul.f32 1.442695, %v355_v2 }
 0x132   : > { %v369_v12 = vmul.f32 1.442695, %v358_v9  ;;  %v371_v14 = vmul.f32 1.442695, %v359_v10  ;;  %v377_v17 = vmul.f32 1.442695, %v362_v11  ;;  %p936_p4 = por %p935_p3, %p934_p1 }
 0x133   : > { %865 = vpow2.f32 %v367_v6  ;;  %v373_v22 = vmul.f32 1.442695, %v360_v20  ;;  %v375_v23 = vmul.f32 1.442695, %v361_v21 }
 0x134   : > { %867 = vpow2.f32 %v365_v7  ;;  %p937_p7 = pnand %p936_p4, %p932_p0 }
 0x135   : > { %869 = vpow2.f32 %v363_v8 }
 0x136   : > { %871 = vpow2.f32 %v369_v12 }
 0x137   : > { %873 = vpow2.f32 %v371_v14 }
 0x138   : > { %875 = vpow2.f32 %v377_v17 }
 0x139   : > { %v866_v16 = vpop.eup %865  ;;  %877 = vpow2.f32 %v373_v22 }
 0x13a   : > { %v868_v18 = vpop.eup %867  ;;  %398 = vperm.xlu2 %863, %v866_v16   ;;  %879 = vpow2.f32 %v375_v23 }
 0x13b   : > { %v870_v19 = vpop.eup %869  ;;  %395 = vperm.xlu1 %862, %v868_v18  }
 0x13c   : > { %392 = vperm.xlu0 %861, %v870_v19   ;;  %v872_v24 = vpop.eup %871 }
 0x13d   : > { %v874_v25 = vpop.eup %873 }
 0x13e   : > { %v876_v26 = vpop.eup %875 }
 0x13f   : > { %v878_v27 = vpop.eup %877 }
 0x140   : > { %v880_v28 = vpop.eup %879 }
 0x142   : > { %401 = vperm.xlu2 %863, %v872_v24  }
 0x143   : > { %404 = vperm.xlu1 %862, %v874_v25  }
 0x144   : > { %413 = vperm.xlu0 %861, %v876_v26  }
 0x14a   : > { %407 = vperm.xlu2 %863, %v878_v27  }
 0x14b   : > { %410 = vperm.xlu1 %862, %v880_v28  }
 0x152   : > { %380 = vperm.xlu2 %863, %v256_v30  }
 0x194   : > { %v399_v31 = vpop.permute.xlu2 %398 }
 0x195   : > { %v417_v40 = vperm.slane %v399_v31, %v1114_v29 }
 0x19c   : > { %v402_v32 = vpop.permute.xlu2 %401 }
 0x19d   : > { %v418_v43 = vperm.slane %v402_v32, %v1114_v29 }
 0x1a4   : > { %v408_v37 = vpop.permute.xlu2 %407 }
 0x1a5   : > { %v420_v47 = vperm.slane %v408_v37, %v1114_v29 }
 0x1ac   : > { %v381_v49 = vpop.permute.xlu2 %380 }
 0x1ad   : > { %v396_v33 = vpop.permute.xlu1 %395  ;;  %vm382_vm9 = vcmp.lt.s32.totalorder %v1114_v29, %v381_v49 }
 0x1ae   : > { %v393_v34 = vpop.permute.xlu0 %392  ;;  %v416_v35 = vperm.slane %v396_v33, %v1114_v29 }
 0x1af   : > { %v415_v36 = vperm.slane %v393_v34, %v1114_v29 }
 0x1b1   : > { %v423_v38 = vsel %vm319_vm1, %v416_v35, %v415_v36 }
 0x1b2   : > { %v424_v41 = vsel %vm321_vm2, %v417_v40, %v423_v38 }
 0x1b3   : > { %v425_v44 = vsel %vm323_vm3, %v418_v43, %v424_v41 }
 0x1b5   : > { %v405_v39 = vpop.permute.xlu1 %404 }
 0x1b6   : > { %v419_v42 = vperm.slane %v405_v39, %v1114_v29  ;;  %v414_v46 = vpop.permute.xlu0 %413 }
 0x1b7   : > { %v422_v51 = vperm.slane %v414_v46, %v1114_v29 }
 0x1b8   : > { %v426_v45 = vsel %vm325_vm4, %v419_v42, %v425_v44 }
 0x1b9   : > { %v427_v52 = vsel %vm327_vm5, %v420_v47, %v426_v45 }
 0x1bd   : > { %v411_v48 = vpop.permute.xlu1 %410 }
 0x1be   : > { %v421_v50 = vperm.slane %v411_v48, %v1114_v29 }
 0x1c0   : > { %v428_v53 = vsel %vm329_vm6, %v421_v50, %v427_v52 }
 0x1c1   : > { %v429_v54 = vsel %vm331_vm7, %v422_v51, %v428_v53 }
 0x1c2   : > { %v431_v55 = vsel %vm382_vm9, %v429_v54, 0.0 }
 0x1c3   : > { %v432_v56 = vsel %vm334_vm8, %v431_v55, 0.0 }
 0x1c4   : > { %433 = vadd.xlane.f32.xlu1 %v432_v56 }
 0x237   : > { %v434_v57 = vpop.xlane.xlu1 %433 }
 0x238   : > { %881 = vrcp.f32 %v434_v57  ;;  %v446_v61 = vand.u32 2147483648, %v434_v57  ;;  %v444_v63 = vand.u32 2147483647, %v434_v57  ;;  %vm440_vm11 = vweird.f32 %v434_v57 }
 0x23a   : > { %v447_v29 = vor.u32 1.1754944e-38, %v446_v61  ;;  %vm445_vm13 = vcmp.eq.f32.partialorder %v444_v63, 8.507059e+37 }
 0x23e   : > { %v882_v58 = vpop.eup %881 }
 0x23f   : > { %v436_v59 = vmul.f32 %v882_v58, %v434_v57  ;;  %vm441_vm10 = vweird.f32 %v882_v58 }
 0x240   : > { %vm442_vm12 = vmor %vm440_vm11, %vm441_vm10 }
 0x241   : > { %v437_v60 = vsub.f32 1.0, %v436_v59 }
 0x243   : > { %v438_v62 = vmul.f32 %v882_v58, %v437_v60 }
 0x245   : > { %v439_v0 = vadd.f32 %v882_v58, %v438_v62 }
 0x247   : > { %v443_v1 = vsel %vm442_vm12, %v882_v58, %v439_v0 }
 0x248   : > { %v448_v2 = vsel %vm445_vm13, %v447_v29, %v443_v1 }
 0x249   : > { %v449_v3 = vmul.f32 %v448_v2, %v431_v55 }
 0x24b   : > { %450 = vst.msk [vmem:[%s246_s30] sm:$0xff] %vm334_vm8, %v449_v3  ;;  %799 = vmatmul.msk.f32.vlgmr.msra.gmra.mxu0 %vm334_vm8, %v449_v3  ;;  %v452_v4 = vrot.slane %v449_v3, 1  ;;  %v453_v5 = vrot.slane %v449_v3, 2  ;;  %v454_v6 = vrot.slane %v449_v3, 3  ;;  %v455_v7 = vrot.slane %v449_v3, 4 }
 0x24c   : > { %v456_v8 = vrot.slane %v449_v3, 5  ;;  %v457_v9 = vrot.slane %v449_v3, 6  ;;  %v458_v10 = vrot.slane %v449_v3, 7 }
 0x24d   : > { %800 = vmatmul.msk.f32.vlgmr.msra.gmra.mxu1 %vm334_vm8, %v452_v4  ;;  %801 = vmatmul.msk.f32.vlgmr.msra.gmra.mxu2 %vm334_vm8, %v453_v5 }
 0x24e   : > { %802 = vmatmul.msk.f32.vlgmr.msra.gmra.mxu3 %vm334_vm8, %v454_v6 }
 0x253   : > { %803 = vmatmul.msk.f32.vlgmr.msrb.gmra.mxu0 %vm334_vm8, %v455_v7 }
 0x255   : > { %804 = vmatmul.msk.f32.vlgmr.msrb.gmra.mxu1 %vm334_vm8, %v456_v8  ;;  %805 = vmatmul.msk.f32.vlgmr.msrb.gmra.mxu2 %vm334_vm8, %v457_v9 }
 0x256   : > { %806 = vmatmul.msk.f32.vlgmr.msrb.gmra.mxu3 %vm334_vm8, %v458_v10 }
 0x2c8   : > { %v478_v11 = vpop.f32.mrf.mxu0 }
 0x2ca   : > { %v500_v12 = vpop.f32.mrf.mxu1 }
 0x2cb   : > { %v643_v13 = vrot.slane %v500_v12, 7 }
 0x2cd   : > { %v644_v17 = vsel %vm319_vm1, %v643_v13, %v478_v11 }
 0x2d0   : > { %v522_v14 = vpop.f32.mrf.mxu2  ;;  %v566_v19 = vpop.f32.mrf.mxu0 }
 0x2d1   : > { %v645_v15 = vrot.slane %v522_v14, 6  ;;  %v544_v16 = vpop.f32.mrf.mxu3  ;;  %v649_v23 = vrot.slane %v566_v19, 4 }
 0x2d2   : > { %v647_v18 = vrot.slane %v544_v16, 5  ;;  %v588_v21 = vpop.f32.mrf.mxu1 }
 0x2d3   : > { %v646_v20 = vsel %vm321_vm2, %v645_v15, %v644_v17  ;;  %v651_v24 = vrot.slane %v588_v21, 3 }
 0x2d4   : > { %v648_v22 = vsel %vm323_vm3, %v647_v18, %v646_v20 }
 0x2d5   : > { %v650_v25 = vsel %vm325_vm4, %v649_v23, %v648_v22 }
 0x2d6   : > { %v652_v30 = vsel %vm327_vm5, %v651_v24, %v650_v25 }
 0x2d8   : > { %v610_v26 = vpop.f32.mrf.mxu2 }
 0x2d9   : > { %v653_v27 = vrot.slane %v610_v26, 2  ;;  %v632_v28 = vpop.f32.mrf.mxu3 }
 0x2da   : > { %v655_v31 = vrot.slane %v632_v28, 1 }
 0x2db   : > { %v654_v32 = vsel %vm329_vm6, %v653_v27, %v652_v30 }
 0x2dc   : > { %v656_v33 = vsel %vm331_vm7, %v655_v31, %v654_v32 }
 0x2dd   : > { %658 = vst.msk [vmem:[%s231_s14] sm:$0xff] %vm268_vm0, %v656_v33 }
 0x2de   : > { %940 = shalt.err (!%p937_p7)
}
 0x2df   : > { %814 = dma.vmem_to_hbm [thread:$0]  (%p1059_p11), %s677_s9, 128, %s679_s11, %s660_s19  }
 0x2e0 PF: > { %s693_s7 = sand.u32 1, %s967_s15   ;;  %p1228_p5 = scmp.ge.s32.totalorder %s979_s18, 2 }
 0x2e1   : > { %s694_s30 = scalar_lea.sflag [#allocation4], %s693_s7 }
 0x2e2   : > { %p821_p8 = pnand %p1228_p5, %p1063_p12 }
 0x2e4   : > { %p822_p10 = pneg %p821_p8 }
 0x2e6   : > { %962 = dma.done.wait (%p822_p10), %s694_s30, 128  }
 0x2e7   : > { %964 = vsyncadd (%p822_p10), %s694_s30, 4294967168  ;;  %p18_p2 = scmp.ge.s32.totalorder %s1034_s21, 4   ;;  %s1229_s15 = smov %s971_s16 }
 0x2e8   : > { %s1230_s16 = smov %s975_s17  ;;  %s1231_s17 = smov %s1046_s24 }
 0x2e9   : > { %s1232_s18 = smov %s1034_s21  ;;  %20 = sbr.rel (!%p18_p2) target bundleno = 5 (0x5), region = 92 }
 0x2ee   :  { %707 = vsyncpa [#allocation3], 1 }
 0x2ef   :  { %709 = vsyncpa [#allocation3 + $0x1], 1 }
 0x2f0   :  { %710 = vsyncpa [#allocation4], 1 }
 0x2f1   :  { %712 = vsyncpa [#allocation4 + $0x1], 1 }

</bundles_post_ra>
